<compile_context>
chip_gen: v5e
topology: v5e:2x2
jax: 0.10.0
libtpu: 0.0.40
codegen_flags: <defaults>
</compile_context>

<pallas_src>
import functools

import jax
import jax.numpy as jnp
from jax.experimental import pallas as pl
from jax.experimental.pallas import tpu as pltpu


LANE = 128    # lane width  (last-dim tiling)
SUBLANE = 8   # sublane width (second-to-last-dim tiling)


def _round_up(x, m):
    return ((x + m - 1) // m) * m


def _cdiv(a, b):
    return (a + b - 1) // b


def _vmem_limit_bytes():
    """Generation-aware VMEM limit: ~85% of capacity (~54 MiB v7x, ~108 MiB v5e/v6e)."""
    try:
        cap = pltpu.get_tpu_info().vmem_capacity_bytes
    except Exception:  # conservative fallback if the query is unavailable
        cap = 64 * 1024 * 1024
    return int(cap * 0.85)


def _pick_batch_tile(B, block_b):
    """Multiple-of-8 batch tile near block_b that minimizes batch padding and,
    when the batch allows it, yields >= 2 grid steps (v7x 2-TensorCore split)."""
    B8 = _round_up(max(B, SUBLANE), SUBLANE)
    tb = min(_round_up(block_b, SUBLANE), B8)
    if B8 >= 2 * SUBLANE:  # prefer >= 2 grid steps so "parallel" can shard 2 TCs
        tb = min(tb, _round_up(_cdiv(B8, 2), SUBLANE))
    best, best_pad = tb, _cdiv(B8, tb) * tb - B
    t = tb - SUBLANE
    while t >= SUBLANE and 2 * t >= tb:  # search [tb/2, tb) for less padding
        pad = _cdiv(B8, t) * t - B
        if pad < best_pad:
            best, best_pad = t, pad
        t -= SUBLANE
    return best


def mlp_kernel(x_ref, w1_ref, b1_ref, w2_ref, b2_ref, out_ref):
    # x / w1 / w2 are bf16 MXU operands; accumulation and elementwise math in f32.
    h = jnp.dot(x_ref[...], w1_ref[...], preferred_element_type=jnp.float32)
    h = jnp.maximum(h + b1_ref[...], 0.0)                            # (TB, Hp) f32
    logits = jnp.dot(h.astype(jnp.bfloat16), w2_ref[...],
                     preferred_element_type=jnp.float32)
    logits = logits + b2_ref[...]                                    # (TB, Cp) f32
    # numerically stable log_softmax over the class axis; padded class columns
    # carry a -1e30 bias so exp(shifted) underflows to 0 and they don't perturb
    # the logsumexp.
    m = jnp.max(logits, axis=1, keepdims=True)
    shifted = logits - m
    lse = jnp.log(jnp.sum(jnp.exp(shifted), axis=1, keepdims=True))
    out_ref[...] = shifted - lse


def pad_params(w1, b1, w2, b2):
    """Pad params to lane-dense shapes and cast weights to bf16 — call ONCE,
    outside the per-step forward path."""
    D, H = w1.shape
    C = w2.shape[1]
    Dp, Hp, Cp = _round_up(D, LANE), _round_up(H, LANE), _round_up(C, LANE)
    f32 = jnp.float32
    w1f = jnp.asarray(w1, f32)
    w2f = jnp.asarray(w2, f32)
    b1f = jnp.asarray(b1, f32).reshape(1, H)
    b2f = jnp.asarray(b2, f32).reshape(1, C)
    if (D, H) != (Dp, Hp):
        w1f = jnp.zeros((Dp, Hp), f32).at[:D, :H].set(w1f)
    if (H, C) != (Hp, Cp):
        w2f = jnp.zeros((Hp, Cp), f32).at[:H, :C].set(w2f)
    b1p = b1f if H == Hp else jnp.zeros((1, Hp), f32).at[:, :H].set(b1f)
    # padded class columns get a huge negative bias -> ~0 weight in the softmax
    b2p = b2f if C == Cp else jnp.full((1, Cp), -1e30, f32).at[:, :C].set(b2f)
    return w1f.astype(jnp.bfloat16), b1p, w2f.astype(jnp.bfloat16), b2p


@functools.partial(jax.jit, static_argnames=("num_class", "block_b"))
def mlp_forward(x, w1p, b1p, w2p, b2p, *, num_class, block_b=512):
    B, D = x.shape
    Dp, Hp = w1p.shape
    Cp = w2p.shape[1]
    C = num_class

    vmem_limit = _vmem_limit_bytes()

    # --- batch tile: large (amortize ~0.35us/step), low padding, VMEM-fitting ---
    TB = _pick_batch_tile(B, block_b)
    resident = 2 * (Dp * Hp + Hp * Cp) + 4 * (Hp + Cp)      # bf16 W (x1 buffer), f32 b
    per_row = 2 * 2 * Dp + 2 * 4 * Cp + 4 * (Hp + Cp)       # 2x bf16 x, 2x f32 out, f32 h/logits
    budget = vmem_limit - resident - (4 << 20)               # 4 MiB slack
    if budget > 0:
        max_tb = max(SUBLANE, (budget // per_row) // SUBLANE * SUBLANE)
        TB = max(SUBLANE, min(TB, max_tb))
    Bp = _round_up(max(B, TB), TB)

    # --- pad + cast activations (pad copy skipped when already aligned) ---
    xb = x.astype(jnp.bfloat16)
    if (B, D) != (Bp, Dp):
        xb = jnp.zeros((Bp, Dp), jnp.bfloat16).at[:B, :D].set(xb)

    grid = (Bp // TB,)

    # Advisory cost estimate for the XLA scheduler (weights read once: resident).
    cost = pl.CostEstimate(
        flops=2 * Bp * (Dp * Hp + Hp * Cp),
        transcendentals=Bp * Cp,  # exp in the logsumexp
        bytes_accessed=(2 * (Bp * Dp + Dp * Hp + Hp * Cp)    # bf16 x + weights
                        + 4 * (Hp + Cp + Bp * Cp)),           # f32 biases + output
    )

    # Constant-index (resident) operands: single-buffer to halve their VMEM.
    resident_spec = functools.partial(pl.BlockSpec, pipeline_mode=pl.Buffered(1))

    out_padded = pl.pallas_call(
        mlp_kernel,
        out_shape=jax.ShapeDtypeStruct((Bp, Cp), jnp.float32),
        grid_spec=pltpu.PrefetchScalarGridSpec(
            num_scalar_prefetch=0,
            grid=grid,
            in_specs=[
                pl.BlockSpec((TB, Dp), lambda i: (i, 0)),     # x: pipelined per batch tile
                resident_spec((Dp, Hp), lambda i: (0, 0)),    # w1: VMEM-resident
                resident_spec((1, Hp), lambda i: (0, 0)),     # b1
                resident_spec((Hp, Cp), lambda i: (0, 0)),    # w2
                resident_spec((1, Cp), lambda i: (0, 0)),     # b2
            ],
            out_specs=pl.BlockSpec((TB, Cp), lambda i: (i, 0)),
        ),
        compiler_params=pltpu.CompilerParams(
            dimension_semantics=("parallel",),   # shards batch steps over v7x's 2 TCs
            vmem_limit_bytes=vmem_limit,
        ),
        cost_estimate=cost,
    )(xb, w1p, b1p, w2p, b2p)

    # strip batch and class padding
    return out_padded[:B, :C]


def init_params(key, input_dim, hidden_dim, num_class):
    # Deterministic init mimicking nn.Linear's uniform(-1/sqrt(fan_in), 1/sqrt(fan_in)).
    k1, k2, k3, k4 = jax.random.split(key, 4)
    lim1 = 1.0 / jnp.sqrt(jnp.float32(input_dim))
    lim2 = 1.0 / jnp.sqrt(jnp.float32(hidden_dim))
    # stored as (in, out) so the kernel computes x @ W (== x @ W_torch.T)
    w1 = jax.random.uniform(k1, (input_dim, hidden_dim), jnp.float32, -lim1, lim1)
    b1 = jax.random.uniform(k2, (1, hidden_dim), jnp.float32, -lim1, lim1)
    w2 = jax.random.uniform(k3, (hidden_dim, num_class), jnp.float32, -lim2, lim2)
    b2 = jax.random.uniform(k4, (1, num_class), jnp.float32, -lim2, lim2)
    return w1, b1, w2, b2


if __name__ == "__main__":
    batch, input_dim, hidden_dim, num_class = 8, 32, 32, 4

    key = jax.random.PRNGKey(0)
    k_x, k_p = jax.random.split(key)
    x = jax.random.normal(k_x, (batch, input_dim), jnp.float32)
    w1, b1, w2, b2 = init_params(k_p, input_dim, hidden_dim, num_class)

    # pad/cast params once, outside the per-call hot path
    w1p, b1p, w2p, b2p = pad_params(w1, b1, w2, b2)

    out = mlp_forward(x, w1p, b1p, w2p, b2p, num_class=num_class)
    jax.block_until_ready(out)

    # pure-JAX f32 reference; kernel uses bf16 dot operands (f32 accumulate),
    # so allow a bf16-level tolerance.
    h_ref = jnp.maximum(x @ w1 + b1, 0.0)
    ref = jax.nn.log_softmax(h_ref @ w2 + b2, axis=1)
    assert out.shape == (batch, num_class)
    err = float(jnp.max(jnp.abs(out - ref)))
    assert err < 5e-2, f"max abs err {err}"

    print("KERNEL_OK")
</pallas_src>

<mosaic_0001>
module attributes {stable_mosaic.version = 11 : i64} {
  func.func @mlp_kernel(%arg0: i32, %arg1: memref<8x128xbf16, #tpu.memory_space<vmem>>, %arg2: memref<128x128xbf16, #tpu.memory_space<vmem>>, %arg3: memref<1x128xf32, #tpu.memory_space<vmem>>, %arg4: memref<128x128xbf16, #tpu.memory_space<vmem>>, %arg5: memref<1x128xf32, #tpu.memory_space<vmem>>, %arg6: memref<8x128xf32, #tpu.memory_space<vmem>>) attributes {dimension_semantics = [#tpu.dimension_semantics<parallel>], iteration_bounds = array<i64: 1>, scalar_prefetch = 0 : i64, scratch_operands = 0 : i64, tpu.core_type = #tpu.core_type<tc>, window_params = [{transform_indices = @transform_0, window_bounds = array<i64: 8, 128>}, {pipeline_mode = #tpu.pipeline_mode<synchronous>, transform_indices = @transform_1, window_bounds = array<i64: 128, 128>}, {pipeline_mode = #tpu.pipeline_mode<synchronous>, transform_indices = @transform_2, window_bounds = array<i64: 1, 128>}, {pipeline_mode = #tpu.pipeline_mode<synchronous>, transform_indices = @transform_3, window_bounds = array<i64: 128, 128>}, {pipeline_mode = #tpu.pipeline_mode<synchronous>, transform_indices = @transform_4, window_bounds = array<i64: 1, 128>}, {transform_indices = @transform_5, window_bounds = array<i64: 8, 128>}]} {
    %c0 = arith.constant 0 : index
    %c0_0 = arith.constant 0 : index
    %0 = vector.load %arg1[%c0, %c0_0] : memref<8x128xbf16, #tpu.memory_space<vmem>>, vector<8x128xbf16>
    %c0_1 = arith.constant 0 : index
    %c0_2 = arith.constant 0 : index
    %1 = vector.load %arg2[%c0_1, %c0_2] : memref<128x128xbf16, #tpu.memory_space<vmem>>, vector<128x128xbf16>
    %cst = arith.constant dense<0.000000e+00> : vector<8x128xf32>
    %2 = tpu.matmul %0, %1, %cst {dimension_numbers = #tpu.dot_dimension_numbers<[1], [0], [0], [1], [0, 0, 1, 1], [], []>} : vector<8x128xbf16>, vector<128x128xbf16>, vector<8x128xf32> -> vector<8x128xf32>
    %c0_3 = arith.constant 0 : index
    %c0_4 = arith.constant 0 : index
    %3 = vector.load %arg3[%c0_3, %c0_4] : memref<1x128xf32, #tpu.memory_space<vmem>>, vector<1x128xf32>
    %4 = vector.broadcast %3 : vector<1x128xf32> to vector<8x128xf32>
    %5 = arith.addf %2, %4 : vector<8x128xf32>
    %cst_5 = arith.constant 0.000000e+00 : f32
    %6 = vector.broadcast %cst_5 : f32 to vector<8x128xf32>
    %7 = arith.maximumf %5, %6 : vector<8x128xf32>
    %8 = arith.truncf %7 : vector<8x128xf32> to vector<8x128xbf16>
    %c0_6 = arith.constant 0 : index
    %c0_7 = arith.constant 0 : index
    %9 = vector.load %arg4[%c0_6, %c0_7] : memref<128x128xbf16, #tpu.memory_space<vmem>>, vector<128x128xbf16>
    %cst_8 = arith.constant dense<0.000000e+00> : vector<8x128xf32>
    %10 = tpu.matmul %8, %9, %cst_8 {dimension_numbers = #tpu.dot_dimension_numbers<[1], [0], [0], [1], [0, 0, 1, 1], [], []>} : vector<8x128xbf16>, vector<128x128xbf16>, vector<8x128xf32> -> vector<8x128xf32>
    %c0_9 = arith.constant 0 : index
    %c0_10 = arith.constant 0 : index
    %11 = vector.load %arg5[%c0_9, %c0_10] : memref<1x128xf32, #tpu.memory_space<vmem>>, vector<1x128xf32>
    %12 = vector.broadcast %11 : vector<1x128xf32> to vector<8x128xf32>
    %13 = arith.addf %10, %12 : vector<8x128xf32>
    %cst_11 = arith.constant dense<0xFF800000> : vector<8xf32>
    %14 = vector.multi_reduction <maximumf>, %13, %cst_11 [1] : vector<8x128xf32> to vector<8xf32>
    %15 = vector.shape_cast %14 : vector<8xf32> to vector<8x1xf32>
    %16 = vector.broadcast %15 : vector<8x1xf32> to vector<8x128xf32>
    %17 = arith.subf %13, %16 : vector<8x128xf32>
    %18 = math.exp %17 : vector<8x128xf32>
    %cst_12 = arith.constant dense<0.000000e+00> : vector<8xf32>
    %19 = vector.multi_reduction <add>, %18, %cst_12 [1] : vector<8x128xf32> to vector<8xf32>
    %20 = vector.shape_cast %19 : vector<8xf32> to vector<8x1xf32>
    %21 = math.log %20 : vector<8x1xf32>
    %22 = vector.broadcast %21 : vector<8x1xf32> to vector<8x128xf32>
    %23 = arith.subf %17, %22 : vector<8x128xf32>
    %c0_13 = arith.constant 0 : index
    %c0_14 = arith.constant 0 : index
    %24 = vector.load %arg6[%c0_13, %c0_14] : memref<8x128xf32, #tpu.memory_space<vmem>>, vector<8x128xf32>
    tpu.vector_store %arg6[%c0_13, %c0_14], %23 {strides = array<i32>} : memref<8x128xf32, #tpu.memory_space<vmem>>, vector<8x128xf32>,
    return
  }
  func.func @transform_0(%arg0: i32) -> (i32, i32) {
    %c0_i32 = arith.constant 0 : i32
    %c0_i32_0 = arith.constant 0 : i32
    return %arg0, %c0_i32 : i32, i32
  }
  func.func @transform_1(%arg0: i32) -> (i32, i32) {
    %c0_i32 = arith.constant 0 : i32
    %c0_i32_0 = arith.constant 0 : i32
    %c0_i32_1 = arith.constant 0 : i32
    return %c0_i32, %c0_i32_0 : i32, i32
  }
  func.func @transform_2(%arg0: i32) -> (i32, i32) {
    %c0_i32 = arith.constant 0 : i32
    %c0_i32_0 = arith.constant 0 : i32
    %c0_i32_1 = arith.constant 0 : i32
    return %c0_i32, %c0_i32_0 : i32, i32
  }
  func.func @transform_3(%arg0: i32) -> (i32, i32) {
    %c0_i32 = arith.constant 0 : i32
    %c0_i32_0 = arith.constant 0 : i32
    %c0_i32_1 = arith.constant 0 : i32
    return %c0_i32, %c0_i32_0 : i32, i32
  }
  func.func @transform_4(%arg0: i32) -> (i32, i32) {
    %c0_i32 = arith.constant 0 : i32
    %c0_i32_0 = arith.constant 0 : i32
    %c0_i32_1 = arith.constant 0 : i32
    return %c0_i32, %c0_i32_0 : i32, i32
  }
  func.func @transform_5(%arg0: i32) -> (i32, i32) {
    %c0_i32 = arith.constant 0 : i32
    %c0_i32_0 = arith.constant 0 : i32
    return %arg0, %c0_i32 : i32, i32
  }
}

</mosaic_0001>

<bundles_post_ra>
// kernel: mlp_forward.1
= control target key start
LH: loop header
LB: loop body
LE: loop exit
PB: predicated region body
PF: predicated region fallthrough
CT: control target
= control target key end

     0   :  { %10 = vsyncpa [#allocation3], 0  ;;  %s428_s0 = inlined_call_operand.vmem [shape: bf16[8,128], index: 0, kind: input, shape index: {}]   ;;  %s429_s1 = inlined_call_operand.hbm [shape: bf16[128,128], index: 1, kind: input, shape index: {}]   ;;  %s430_s2 = inlined_call_operand.vmem [shape: f32[1,128], index: 2, kind: input, shape index: {}]   ;;  %s431_s3 = inlined_call_operand.hbm [shape: bf16[128,128], index: 3, kind: input, shape index: {}]   ;;  %s432_s4 = inlined_call_operand.vmem [shape: f32[1,128], index: 4, kind: input, shape index: {}]   ;;  %s433_s5 = inlined_call_operand.vmem [shape: f32[8,128], index: 5, kind: output, shape index: {}]  }
   0x1   :  { %s18_s20 = sshll.u32 %s429_s1, 4  ;;  %s19_s20 = int_to_ptr.hbm [resolvable:$true] %s18_s20 }
   0x2   :  { %11 = vsyncpa [#allocation5], 0  ;;  %s376_s21 = smov [#allocation2]   ;;  %s33_s25 = sshll.u32 %s431_s3, 4  ;;  %s34_s25 = int_to_ptr.hbm [resolvable:$true] %s33_s25 }
   0x3   :  { %s20_s22 = sshll.u32 %s376_s21, 4  ;;  %s377_s26 = smov 64   ;;  %s21_s22 = int_to_ptr.vmem [resolvable:$true] %s20_s22 }
   0x4   :  { %s378_s27 = smov 4   ;;  %s379_s28 = smov [#allocation4]  }
   0x5   :  { %26 = dma.hbm_to_vmem [thread:$0]  %s19_s20, 1024, %s21_s22, [#allocation3], %s377_s26, %s377_s26, %s378_s27  }
   0x6   :  { %s35_s29 = sshll.u32 %s379_s28, 4  ;;  %s36_s29 = int_to_ptr.vmem [resolvable:$true] %s35_s29 }
   0x7   :  { %41 = dma.hbm_to_vmem [thread:$0]  %s34_s25, 1024, %s36_s29, [#allocation5], %s377_s26, %s377_s26, %s378_s27  }
   0x8   :  { %372 = dma.done.wait [#allocation3], 1024  }
   0x9   :  { %373 = vsyncadd [#allocation3], 4294966272 }
   0xa   :  { %374 = dma.done.wait [#allocation5], 1024  }
   0xb   :  { %375 = vsyncadd [#allocation5], 4294966272  ;;  %v305_v0 = vld [vmem:[#allocation2 + $0x38] sm:$0xff]  ;;  %v304_v1 = vld [vmem:[#allocation2 + $0x30] sm:$0xff] }
   0xc   :  { %121 = vmatpush.bf16.msra.mxu0 %v305_v0  ;;  %v313_v2 = vld [vmem:[#allocation4 + $0x38] sm:$0xff]  ;;  %v312_v3 = vld [vmem:[#allocation4 + $0x30] sm:$0xff]  ;;  %v303_v4 = vld [vmem:[#allocation2 + $0x28] sm:$0xff] }
   0xd   :  { %204 = vmatpush.bf16.msra.mxu1 %v313_v2  ;;  %v311_v5 = vld [vmem:[#allocation4 + $0x28] sm:$0xff]  ;;  %v302_v6 = vld [vmem:[#allocation2 + $0x20] sm:$0xff]  ;;  %v301_v8 = vld [vmem:[#allocation2 + $0x18] sm:$0xff] }
   0xe   :  { %v310_v7 = vld [vmem:[#allocation4 + $0x20] sm:$0xff]  ;;  %v309_v9 = vld [vmem:[#allocation4 + $0x18] sm:$0xff]  ;;  %v300_v10 = vld [vmem:[#allocation2 + $0x10] sm:$0xff] }
   0xf   :  { %v308_v11 = vld [vmem:[#allocation4 + $0x10] sm:$0xff]  ;;  %v299_v12 = vld [vmem:[#allocation2 + $0x8] sm:$0xff]  ;;  %v298_v13 = vld [vmem:[#allocation2] sm:$0xff] }
  0x10   :  { %122 = vmatpush.bf16.msra.mxu0 %v304_v1  ;;  %v52_v14 = vld [vmem:[%s428_s0] sm:$0xf]  ;;  %v307_v15 = vld [vmem:[#allocation4 + $0x8] sm:$0xff] }
  0x11   :  { %205 = vmatpush.bf16.msra.mxu1 %v312_v3  ;;  %v306_v16 = vld [vmem:[#allocation4] sm:$0xff] }
  0x12   :  { %v318_v17 = vld [vmem:[%s430_s2] ss:$0 sm:$0xff] }
  0x13   :  { %v319_v23 = vld [vmem:[%s432_s4] ss:$0 sm:$0xff] }
  0x14   :  { %123 = vmatpush.bf16.msra.mxu0 %v303_v4 }
  0x15   :  { %206 = vmatpush.bf16.msra.mxu1 %v311_v5 }
  0x18   :  { %124 = vmatpush.bf16.msra.mxu0 %v302_v6 }
  0x19   :  { %207 = vmatpush.bf16.msra.mxu1 %v310_v7 }
  0x1c   :  { %125 = vmatpush.bf16.msra.mxu0 %v301_v8 }
  0x1d   :  { %208 = vmatpush.bf16.msra.mxu1 %v309_v9 }
  0x20   :  { %126 = vmatpush.bf16.msra.mxu0 %v300_v10 }
  0x21   :  { %209 = vmatpush.bf16.msra.mxu1 %v308_v11 }
  0x24   :  { %127 = vmatpush.bf16.msra.mxu0 %v299_v12 }
  0x25   :  { %210 = vmatpush.bf16.msra.mxu1 %v307_v15 }
  0x28   :  { %128 = vmatpush.bf16.msra.mxu0 %v298_v13 }
  0x29   :  { %211 = vmatpush.bf16.msra.mxu1 %v306_v16 }
  0x2b   :  { %129 = vmatmul.bf16.vlgmr.msra.gmra.mxu0 %v52_v14 }
  0xa8   :  { %v130_v18 = vpop.f32.mrf.mxu0 }
  0xa9   :  { %v131_v19 = vadd.f32 %v318_v17, %v130_v18 }
  0xab   :  { %v134_v20 = vmax.f32 %v131_v19, 0.0 }
  0xad   :  { %v135_v21 = vpack.c.bf16 %v134_v20, %v134_v20 }
  0xaf   :  { %212 = vmatmul.bf16.vlgmr.msra.gmra.mxu1 %v135_v21 }
  0xb0   :  { %v132_v22 = vpop.f32.mrf.mxu0 }
 0x12c   :  { %v213_v24 = vpop.f32.mrf.mxu1 }
 0x12d   :  { %v214_v25 = vadd.f32 %v319_v23, %v213_v24 }
 0x12f   :  { %217 = vmax.xlane.f32.xlu0 %v214_v25 }
 0x134   :  { %v215_v26 = vpop.f32.mrf.mxu1 }
 0x1a2   :  { %v218_v27 = vpop.xlane.xlu0 %217 }
 0x1a3   :  { %v219_v28 = vsub.f32 %v214_v25, %v218_v27 }
 0x1a5   :  { %v220_v29 = vmul.f32 1.442695, %v219_v28 }
 0x1a7   :  { %320 = vpow2.f32 %v220_v29 }
 0x1ad   :  { %v321_v30 = vpop.eup %320 }
 0x1ae   :  { %222 = vadd.xlane.f32.xlu0 %v321_v30 }
 0x221   :  { %v223_v31 = vpop.xlane.xlu0 %222 }
 0x222   :  { %322 = vlog2.f32 %v223_v31 }
 0x228   :  { %v323_v32 = vpop.eup %322 }
 0x229   :  { %v225_v33 = vmul.f32 0.6931472, %v323_v32 }
 0x22b   :  { %v226_v34 = vsub.f32 %v219_v28, %v225_v33 }
 0x22d   :  { %227 = vst [vmem:[%s433_s5] sm:$0xff] %v226_v34 }
 0x22e   :  { %232 = vsyncpa [#allocation3], 1 }
 0x22f   :  { %233 = vsyncpa [#allocation5], 1 }

</bundles_post_ra>
